<compile_context>
chip_gen: v7x
topology: tpu7x:2x2x1
jax: 0.10.0
libtpu: 0.0.40
codegen_flags: <defaults>
</compile_context>

<pallas_src>
import math

import jax
import jax.numpy as jnp
from jax.experimental import pallas as pl
from jax.experimental.pallas import tpu as pltpu


def _gelu_tanh(x):
    # GELU with tanh approximation, identical to torch.nn.GELU(approximate='tanh'):
    #   0.5*x*(1 + tanh(c*(x + 0.044715*x^3))) == x * sigmoid(2c*(x + 0.044715*x^3))
    # Sigmoid form saves a VPU add + mul; the transcendental stays on the EUP slot.
    c2 = 2.0 * math.sqrt(2.0 / math.pi)
    return x * jax.nn.sigmoid(c2 * (x + 0.044715 * (x * x * x)))


def _round_up(x, m):
    return ((x + m - 1) // m) * m


def _sublane_mult(dtype):
    # Second-to-last block dim multiple: 8 rows for 4-byte, 16 for 2-byte, 32 for 1-byte.
    return max(8, 32 // jnp.dtype(dtype).itemsize)


def _pick_tile(total, target, mult):
    """Largest multiple of `mult` that divides `total` and is <= target, else `total`."""
    if total <= target:
        return total
    t = (target // mult) * mult
    while t >= mult:
        if total % t == 0:
            return t
        t -= mult
    return total


def _vmem_capacity_bytes():
    try:
        cap = int(pltpu.get_tpu_info().vmem_capacity_bytes)
        if cap > 0:
            return cap
    except Exception:
        pass
    return 64 * 1024 * 1024  # conservative fallback (v7x per-TensorCore VMEM)


# ---------------------------------------------------------------------------
# Kernels
# ---------------------------------------------------------------------------

def mlp_resident_kernel(x_ref, w1_ref, b1_ref, w2_ref, b2_ref, o_ref):
    # Weights fully resident in VMEM: DMA'd once for the whole call; grid only over M.
    h = jnp.dot(x_ref[...], w1_ref[...], preferred_element_type=jnp.float32)
    h = h + b1_ref[...].astype(jnp.float32)
    h = _gelu_tanh(h)                      # f32 (v5e VPU/EUP have no bf16)
    out = jnp.dot(h.astype(w2_ref.dtype), w2_ref[...],
                  preferred_element_type=jnp.float32)
    out = out + b2_ref[...].astype(jnp.float32)
    o_ref[...] = out.astype(o_ref.dtype)


def mlp_streamed_kernel(x_ref, w1_ref, b1_ref, w2_ref, b2_ref, o_ref, acc_ref):
    # x_ref:  (tm, D)   activation row tile (constant over the H axis -> fetched once)
    # w1_ref: (D, th)   c_fc weight column slab (streamed)
    # b1_ref: (1, th)   c_fc bias slab
    # w2_ref: (th, D)   c_proj weight row slab (streamed)
    # b2_ref: (1, D)    c_proj bias (constant block)
    # o_ref:  (tm, D)   output row tile (written on the last H step)
    # acc_ref:(tm, D)   f32 accumulator (VMEM scratch, persists across H steps)
    hs = pl.program_id(1)

    h = jnp.dot(x_ref[...], w1_ref[...], preferred_element_type=jnp.float32)
    h = h + b1_ref[...].astype(jnp.float32)
    h = _gelu_tanh(h)
    contrib = jnp.dot(h.astype(w2_ref.dtype), w2_ref[...],
                      preferred_element_type=jnp.float32)

    @pl.when(hs == 0)
    def _():
        # Fold the c_proj bias into the first partial sum (no init-then-+=).
        acc_ref[...] = b2_ref[...].astype(jnp.float32) + contrib

    @pl.when(hs > 0)
    def _():
        acc_ref[...] += contrib

    @pl.when(hs == pl.num_programs(1) - 1)
    def _():
        o_ref[...] = acc_ref[...].astype(o_ref.dtype)


# ---------------------------------------------------------------------------
# Wrapper
# ---------------------------------------------------------------------------

def mlp_pallas(x, w_fc, b_fc, w_proj, b_proj, *, tm=512, th=1024,
               mxu_dtype=None, force_streamed=False):
    """x: (B, T, D). w_fc: (D, 4D), b_fc: (4D,), w_proj: (4D, D), b_proj: (D,).

    mxu_dtype: optionally cast activations/weights (not biases) to a MXU-native dtype
    (e.g. jnp.bfloat16) for v6e/v7x; accumulation stays f32, output keeps x.dtype.
    """
    B, T, D = x.shape
    Din, H = w_fc.shape
    assert Din == D and w_proj.shape == (H, D)
    out_dtype = x.dtype

    if mxu_dtype is not None:
        x = x.astype(mxu_dtype)
        w_fc = w_fc.astype(mxu_dtype)
        w_proj = w_proj.astype(mxu_dtype)

    M = B * T
    x2 = x.reshape(M, D)
    b_fc2 = b_fc.reshape(1, H)
    b_proj2 = b_proj.reshape(1, D)

    x_bytes = jnp.dtype(x2.dtype).itemsize
    w_bytes = jnp.dtype(w_fc.dtype).itemsize
    o_bytes = jnp.dtype(out_dtype).itemsize
    sub = _sublane_mult(x2.dtype)

    cap = _vmem_capacity_bytes()
    budget = int(cap * 0.75)  # headroom for compiler scratch; ~48 MiB v7x, ~96 MiB v5e/v6e

    # Row tile: large enough to amortize weight streaming (MXU roofline needs ~>=512
    # rows on v6e), rounded to the dtype sublane multiple, never larger than padded M.
    tm = max(sub, (min(tm, _round_up(M, sub)) // sub) * sub)

    def resident_bytes(tm_):
        return (2 * 2 * D * H * w_bytes                 # both weight mats, double-buffered
                + 2 * (H + D) * w_bytes                 # biases
                + 2 * tm_ * D * (x_bytes + o_bytes)     # x / out tiles, double-buffered
                + tm_ * H * (4 + w_bytes)               # f32 hidden + cast copy
                + tm_ * D * 4                           # f32 result before cast
                + (2 << 20))                            # slack

    def streamed_bytes(tm_, th_):
        return (2 * 2 * D * th_ * w_bytes               # w_fc / w_proj slabs, double-buffered
                + 2 * (th_ + D) * w_bytes
                + 2 * tm_ * D * (x_bytes + o_bytes)
                + tm_ * D * 4                           # f32 accumulator
                + tm_ * th_ * (4 + w_bytes)             # f32 hidden + cast copy
                + (2 << 20))

    use_resident = (not force_streamed) and resident_bytes(tm) <= budget

    if use_resident:
        # v7x: 2 TensorCores shard the "parallel" M axis -> aim for >=2 tiles.
        if (_round_up(M, tm) // tm) < 2 and tm > sub:
            tm = max(sub, _round_up((M + 1) // 2, sub))
    else:
        # Hidden slab: multiple of 128 lanes dividing H (or full H for tiny configs).
        th = _pick_tile(H, min(th, H), 128)
        while streamed_bytes(tm, th) > budget and th > 128:
            new_th = _pick_tile(H, max(128, th // 2), 128)
            if new_th >= th:
                break
            th = new_th
        while streamed_bytes(tm, th) > budget and tm > sub:
            tm = max(sub, ((tm // 2) // sub) * sub)

    M_pad = _round_up(M, tm)
    if M_pad != M:
        x2 = jnp.pad(x2, ((0, M_pad - M), (0, 0)))

    if use_resident:
        out = pl.pallas_call(
            mlp_resident_kernel,
            out_shape=jax.ShapeDtypeStruct((M_pad, D), out_dtype),
            grid_spec=pltpu.PrefetchScalarGridSpec(
                num_scalar_prefetch=0,
                grid=(M_pad // tm,),
                in_specs=[
                    pl.BlockSpec((tm, D), lambda i: (i, 0)),   # x row tile
                    pl.BlockSpec((D, H), lambda i: (0, 0)),    # c_fc weight (resident)
                    pl.BlockSpec((1, H), lambda i: (0, 0)),    # c_fc bias
                    pl.BlockSpec((H, D), lambda i: (0, 0)),    # c_proj weight (resident)
                    pl.BlockSpec((1, D), lambda i: (0, 0)),    # c_proj bias
                ],
                out_specs=pl.BlockSpec((tm, D), lambda i: (i, 0)),
            ),
            compiler_params=pltpu.CompilerParams(
                dimension_semantics=("parallel",),
                vmem_limit_bytes=budget),
        )(x2, w_fc, b_fc2, w_proj, b_proj2)
    else:
        out = pl.pallas_call(
            mlp_streamed_kernel,
            out_shape=jax.ShapeDtypeStruct((M_pad, D), out_dtype),
            grid_spec=pltpu.PrefetchScalarGridSpec(
                num_scalar_prefetch=0,
                grid=(M_pad // tm, H // th),
                in_specs=[
                    pl.BlockSpec((tm, D), lambda i, h: (i, 0)),  # x row tile (reused over h)
                    pl.BlockSpec((D, th), lambda i, h: (0, h)),  # c_fc column slab (streamed)
                    pl.BlockSpec((1, th), lambda i, h: (0, h)),  # c_fc bias slab
                    pl.BlockSpec((th, D), lambda i, h: (h, 0)),  # c_proj row slab (streamed)
                    pl.BlockSpec((1, D), lambda i, h: (0, 0)),   # c_proj bias (constant)
                ],
                out_specs=pl.BlockSpec((tm, D), lambda i, h: (i, 0)),
                scratch_shapes=[pltpu.VMEM((tm, D), jnp.float32)],
            ),
            compiler_params=pltpu.CompilerParams(
                # M tiles independent (megacore shard); H is the accumulated reduction (last).
                dimension_semantics=("parallel", "arbitrary"),
                vmem_limit_bytes=budget),
        )(x2, w_fc, b_fc2, w_proj, b_proj2)

    if M_pad != M:
        out = out[:M]
    return out.reshape(B, T, D)


def mlp_reference(x, w_fc, b_fc, w_proj, b_proj):
    xf = x.astype(jnp.float32)
    c = math.sqrt(2.0 / math.pi)
    h = jnp.einsum("btd,dh->bth", xf, w_fc.astype(jnp.float32)) + b_fc.astype(jnp.float32)
    h = 0.5 * h * (1.0 + jnp.tanh(c * (h + 0.044715 * h ** 3)))   # torch GELU(tanh)
    return (jnp.einsum("bth,hd->btd", h, w_proj.astype(jnp.float32))
            + b_proj.astype(jnp.float32))


# TODO(synk): only the MLP sub-block of GPT is kernelized here; attention, LayerNorm,
# embeddings and the lm_head of the full GPT forward are left to stock XLA ops.

if __name__ == "__main__":
    # Small GPT-2-like config: n_embd=32 -> hidden=128, batch=2, seq=8
    B, T, D = 2, 8, 32
    H = 4 * D

    key = jax.random.PRNGKey(0)
    kx, k1, k2 = jax.random.split(key, 3)

    x = jax.random.normal(kx, (B, T, D), dtype=jnp.float32)
    # Deterministic "init": normal(0, 0.02) weights, zero biases (GPT-2 style)
    w_fc = 0.02 * jax.random.normal(k1, (D, H), dtype=jnp.float32)
    b_fc = jnp.zeros((H,), dtype=jnp.float32)
    w_proj = 0.02 * jax.random.normal(k2, (H, D), dtype=jnp.float32)
    b_proj = jnp.zeros((D,), dtype=jnp.float32)

    ref = mlp_reference(x, w_fc, b_fc, w_proj, b_proj)

    # 1) f32, resident-weights fast path (ragged M also splits into >=2 parallel tiles).
    out = jax.block_until_ready(mlp_pallas(x, w_fc, b_fc, w_proj, b_proj))
    assert out.shape == (B, T, D)
    assert jnp.allclose(out, ref, atol=1e-4, rtol=1e-4)

    # 2) Streamed-slab path (forced): ragged M + multiple hidden slabs exercises padding
    #    and the hs==0 / hs>0 / last-step accumulator logic.
    D2, H2 = 128, 512
    B2, T2 = 3, 5
    ks = jax.random.split(jax.random.PRNGKey(1), 3)
    x_s = jax.random.normal(ks[0], (B2, T2, D2), dtype=jnp.float32)
    w_fc_s = 0.02 * jax.random.normal(ks[1], (D2, H2), dtype=jnp.float32)
    b_fc_s = jnp.zeros((H2,), dtype=jnp.float32)
    w_proj_s = 0.02 * jax.random.normal(ks[2], (H2, D2), dtype=jnp.float32)
    b_proj_s = jnp.zeros((D2,), dtype=jnp.float32)
    out_s = jax.block_until_ready(
        mlp_pallas(x_s, w_fc_s, b_fc_s, w_proj_s, b_proj_s,
                   force_streamed=True, th=256))
    ref_s = mlp_reference(x_s, w_fc_s, b_fc_s, w_proj_s, b_proj_s)
    assert jnp.allclose(out_s, ref_s, atol=1e-4, rtol=1e-4)

    # 3) bf16 weights/activations (v6e/v7x MXU-native path): f32 accumulation + f32 GELU.
    out_bf16 = jax.block_until_ready(
        mlp_pallas(x.astype(jnp.bfloat16),
                   w_fc.astype(jnp.bfloat16), b_fc.astype(jnp.bfloat16),
                   w_proj.astype(jnp.bfloat16), b_proj.astype(jnp.bfloat16)))
    assert out_bf16.dtype == jnp.bfloat16
    assert jnp.allclose(out_bf16.astype(jnp.float32), ref, atol=2e-2, rtol=2e-2)

    # 4) f32 inputs with in-kernel bf16 MXU cast (recovers MXU throughput on v6e/v7x).
    out_mxu = jax.block_until_ready(
        mlp_pallas(x, w_fc, b_fc, w_proj, b_proj, mxu_dtype=jnp.bfloat16))
    assert out_mxu.dtype == jnp.float32
    assert jnp.allclose(out_mxu, ref, atol=2e-2, rtol=2e-2)

    print("KERNEL_OK")
</pallas_src>

<mosaic_0001>
module attributes {stable_mosaic.version = 11 : i64} {
  func.func @mlp_resident_kernel(%arg0: i32, %arg1: memref<8x32xf32, #tpu.memory_space<vmem>>, %arg2: memref<32x128xf32, #tpu.memory_space<vmem>>, %arg3: memref<1x128xf32, #tpu.memory_space<vmem>>, %arg4: memref<128x32xf32, #tpu.memory_space<vmem>>, %arg5: memref<1x32xf32, #tpu.memory_space<vmem>>, %arg6: memref<8x32xf32, #tpu.memory_space<vmem>>) attributes {dimension_semantics = [#tpu.dimension_semantics<parallel>], iteration_bounds = array<i64: 2>, scalar_prefetch = 0 : i64, scratch_operands = 0 : i64, tpu.core_type = #tpu.core_type<tc>, window_params = [{transform_indices = @transform_0, window_bounds = array<i64: 8, 32>}, {pipeline_mode = #tpu.pipeline_mode<synchronous>, transform_indices = @transform_1, window_bounds = array<i64: 32, 128>}, {pipeline_mode = #tpu.pipeline_mode<synchronous>, transform_indices = @transform_2, window_bounds = array<i64: 1, 128>}, {pipeline_mode = #tpu.pipeline_mode<synchronous>, transform_indices = @transform_3, window_bounds = array<i64: 128, 32>}, {pipeline_mode = #tpu.pipeline_mode<synchronous>, transform_indices = @transform_4, window_bounds = array<i64: 1, 32>}, {transform_indices = @transform_5, window_bounds = array<i64: 8, 32>}]} {
    %c0 = arith.constant 0 : index
    %c0_0 = arith.constant 0 : index
    %0 = vector.load %arg1[%c0, %c0_0] : memref<8x32xf32, #tpu.memory_space<vmem>>, vector<8x32xf32>
    %c0_1 = arith.constant 0 : index
    %c0_2 = arith.constant 0 : index
    %1 = vector.load %arg2[%c0_1, %c0_2] : memref<32x128xf32, #tpu.memory_space<vmem>>, vector<32x128xf32>
    %cst = arith.constant dense<0.000000e+00> : vector<8x128xf32>
    %2 = tpu.matmul %0, %1, %cst {dimension_numbers = #tpu.dot_dimension_numbers<[1], [0], [0], [1], [0, 0, 1, 1], [], []>} : vector<8x32xf32>, vector<32x128xf32>, vector<8x128xf32> -> vector<8x128xf32>
    %c0_3 = arith.constant 0 : index
    %c0_4 = arith.constant 0 : index
    %3 = vector.load %arg3[%c0_3, %c0_4] : memref<1x128xf32, #tpu.memory_space<vmem>>, vector<1x128xf32>
    %4 = vector.broadcast %3 : vector<1x128xf32> to vector<8x128xf32>
    %5 = arith.addf %2, %4 : vector<8x128xf32>
    %6 = arith.mulf %5, %5 : vector<8x128xf32>
    %7 = arith.mulf %6, %5 : vector<8x128xf32>
    %cst_5 = arith.constant 4.471500e-02 : f32
    %8 = vector.broadcast %cst_5 : f32 to vector<8x128xf32>
    %9 = arith.mulf %8, %7 : vector<8x128xf32>
    %10 = arith.addf %5, %9 : vector<8x128xf32>
    %cst_6 = arith.constant 1.59576917 : f32
    %11 = vector.broadcast %cst_6 : f32 to vector<8x128xf32>
    %12 = arith.mulf %11, %10 : vector<8x128xf32>
    %13 = arith.negf %12 : vector<8x128xf32>
    %14 = math.exp %13 : vector<8x128xf32>
    %cst_7 = arith.constant 1.000000e+00 : f32
    %15 = vector.broadcast %cst_7 : f32 to vector<8x128xf32>
    %16 = arith.addf %15, %14 : vector<8x128xf32>
    %17 = arith.divf %15, %16 : vector<8x128xf32>
    %18 = arith.mulf %5, %17 : vector<8x128xf32>
    %c0_8 = arith.constant 0 : index
    %c0_9 = arith.constant 0 : index
    %19 = vector.load %arg4[%c0_8, %c0_9] : memref<128x32xf32, #tpu.memory_space<vmem>>, vector<128x32xf32>
    %cst_10 = arith.constant dense<0.000000e+00> : vector<8x32xf32>
    %20 = tpu.matmul %18, %19, %cst_10 {dimension_numbers = #tpu.dot_dimension_numbers<[1], [0], [0], [1], [0, 0, 1, 1], [], []>} : vector<8x128xf32>, vector<128x32xf32>, vector<8x32xf32> -> vector<8x32xf32>
    %c0_11 = arith.constant 0 : index
    %c0_12 = arith.constant 0 : index
    %21 = vector.load %arg5[%c0_11, %c0_12] : memref<1x32xf32, #tpu.memory_space<vmem>>, vector<1x32xf32>
    %22 = vector.broadcast %21 : vector<1x32xf32> to vector<8x32xf32>
    %23 = arith.addf %20, %22 : vector<8x32xf32>
    %c0_13 = arith.constant 0 : index
    %c0_14 = arith.constant 0 : index
    %24 = vector.load %arg6[%c0_13, %c0_14] : memref<8x32xf32, #tpu.memory_space<vmem>>, vector<8x32xf32>
    tpu.vector_store %arg6[%c0_13, %c0_14], %23 {strides = array<i32>} : memref<8x32xf32, #tpu.memory_space<vmem>>, vector<8x32xf32>,
    return
  }
  func.func @transform_0(%arg0: i32) -> (i32, i32) {
    %c0_i32 = arith.constant 0 : i32
    %c0_i32_0 = arith.constant 0 : i32
    return %arg0, %c0_i32 : i32, i32
  }
  func.func @transform_1(%arg0: i32) -> (i32, i32) {
    %c0_i32 = arith.constant 0 : i32
    %c0_i32_0 = arith.constant 0 : i32
    %c0_i32_1 = arith.constant 0 : i32
    return %c0_i32, %c0_i32_0 : i32, i32
  }
  func.func @transform_2(%arg0: i32) -> (i32, i32) {
    %c0_i32 = arith.constant 0 : i32
    %c0_i32_0 = arith.constant 0 : i32
    %c0_i32_1 = arith.constant 0 : i32
    return %c0_i32, %c0_i32_0 : i32, i32
  }
  func.func @transform_3(%arg0: i32) -> (i32, i32) {
    %c0_i32 = arith.constant 0 : i32
    %c0_i32_0 = arith.constant 0 : i32
    %c0_i32_1 = arith.constant 0 : i32
    return %c0_i32, %c0_i32_0 : i32, i32
  }
  func.func @transform_4(%arg0: i32) -> (i32, i32) {
    %c0_i32 = arith.constant 0 : i32
    %c0_i32_0 = arith.constant 0 : i32
    %c0_i32_1 = arith.constant 0 : i32
    return %c0_i32, %c0_i32_0 : i32, i32
  }
  func.func @transform_5(%arg0: i32) -> (i32, i32) {
    %c0_i32 = arith.constant 0 : i32
    %c0_i32_0 = arith.constant 0 : i32
    return %arg0, %c0_i32 : i32, i32
  }
}

</mosaic_0001>

<bundles_post_ra>
// kernel: tpu_custom_call.1
= control target key start
LH: loop header
LB: loop body
LE: loop exit
PB: predicated region body
PF: predicated region fallthrough
CT: control target
= control target key end

     0   :  { %10 = vsyncpa [#allocation3], 0  ;;  %s909_s0 = inlined_call_operand.vmem [shape: f32[16,32], index: 0, kind: input, shape index: {}]   ;;  %s910_s1 = inlined_call_operand.vmem [shape: f32[32,128], index: 1, kind: input, shape index: {}]   ;;  %s911_s2 = inlined_call_operand.vmem [shape: f32[1,128], index: 2, kind: input, shape index: {}]   ;;  %s912_s3 = inlined_call_operand.vmem [shape: f32[128,32], index: 3, kind: input, shape index: {}]   ;;  %s913_s4 = inlined_call_operand.vmem [shape: f32[1,32], index: 4, kind: input, shape index: {}]   ;;  %s914_s5 = inlined_call_operand.hbm [shape: f32[16,32], index: 5, kind: output, shape index: {}]  }
   0x1   :  { %12 = vsyncpa [#allocation3 + $0x1], 0  ;;  %s741_s18 = smov 0   ;;  %s743_s19 = smov 0  }
   0x2   :  { %s745_s20 = smov 0   ;;  %s747_s21 = smov 0  }
   0x3 LB: > { %s762_s22 = sadd.s32 4294967295, %s705_s21   ;;  %s485_s23 = sadd.s32 4294967294, %s705_s21   ;;  %s705_s21 = sphi %s747_s21, %s920_s21   ;;  %s701_s20 = sphi %s745_s20, %s919_s20   ;;  %s697_s19 = sphi %s743_s19, %s918_s19   ;;  %s693_s18 = sphi %s741_s18, %s917_s18  }
   0x4   : > { %s766_s24 = sadd.s32 1, %s705_s21   ;;  %s135_s25 = sadd.s32 1, %s701_s20 }
   0x5   : > { %s132_s26 = ssub.s32 %s705_s21, %s766_s24  ;;  %p145_p0 = scmp.ne.s32.totalorder %s701_s20, %s697_s19 }
   0x6   : > { %p133_p1 = scmp.eq.s32.totalorder %s132_s26, 0  ;;  %p146_p2 = scmp.eq.s32.totalorder %s762_s22, 1 }
   0x7   : > { %p151_p3 = scmp.ne.s32.totalorder %s697_s19, %s693_s18  ;;  %p152_p4 = scmp.eq.s32.totalorder %s485_s23, 1 }
   0x8   : > { %s777_s27 = scalar_select %p133_p1, %s701_s20, %s135_s25  }
   0x9   : > { %p779_p5 = por %p146_p2, %p145_p0  ;;  %p783_p6 = por %p152_p4, %p151_p3 }
   0xa   : > { %p488_p7 = scmp.ge.s32.totalorder %s705_s21, 1  ;;  %p189_p8 = scmp.lt.s32.totalorder %s705_s21, 3 }
   0xc   : > { %p190_p9 = pnand %p488_p7, %p189_p8 }
   0xd   : > { %v221_v0 = vld [vmem:[%s910_s1] sm:$0xff] (!%p190_p9)  ;;  %v222_v1 = vld [vmem:[%s910_s1 + $0x8] sm:$0xff] (!%p190_p9)  ;;  %v223_v2 = vld [vmem:[%s910_s1 + $0x10] sm:$0xff] (!%p190_p9)  ;;  %v707_v3 = vmov (!%p190_p9), 0.0|0.0   ;;  %vm708_vm0 = vmmov (!%p190_p9), 0   ;;  %v709_v6 = vmov (!%p190_p9), 0.0  }
   0xe   : > { %193 = sbr.rel (%p190_p9) target bundleno = 506 (0x1fa), region = 40  ;;  %567 = vmatprep.subr.bf16.mxu0 (!%p190_p9), %v707_v3  ;;  %v568_v4 = vpack.c.bf16 (!%p190_p9), %v222_v1, %v221_v0  ;;  %v224_v5 = vld [vmem:[%s910_s1 + $0x18] sm:$0xff] (!%p190_p9)  ;;  %529 = vmatprep.mubr.msk.f32.mxu0 (!%p190_p9), %vm708_vm0, %v709_v6  ;;  %p216_p10 = scmp.lt.s32.totalorder (!%p190_p9), %s762_s22, 1  ;;  %vm232_vm1 = vcmask (!%p190_p9), 261120   ;;  %v318_v9 = vld [vmem:[%s912_s3] sm:$0xff] (!%p190_p9)  ;;  %v319_v10 = vld [vmem:[%s912_s3 + $0x8] sm:$0xff] (!%p190_p9) }
   0xf   : > { %573 = vmatprep.subr.bf16.mxu1 (!%p190_p9), %v707_v3  ;;  %564 = vmatprep.mubr.msk.f32.mxu1 (!%p190_p9), %vm708_vm0, %v709_v6  ;;  %v571_v7 = vpack.c.bf16 (!%p190_p9), %v224_v5, %v223_v2  ;;  %v574_v11 = vpack.c.bf16 (!%p190_p9), %v319_v10, %v318_v9  ;;  %v320_v12 = vld [vmem:[%s912_s3 + $0x10] sm:$0xff] (!%p190_p9)  ;;  %v321_v13 = vld [vmem:[%s912_s3 + $0x18] sm:$0xff] (!%p190_p9)  ;;  %v322_v15 = vld [vmem:[%s912_s3 + $0x20] sm:$0xff] (!%p190_p9)  ;;  %s213_s26 = sand.u32 (!%p190_p9), 1, %s697_s19   ;;  %s496_s8 = sshll.u32 (!%p190_p9), %s762_s22, 7 }
  0x10   : > { %569 = vmatpush3.bf16.msra.mxu0 (!%p190_p9), %v568_v4  ;;  %v577_v14 = vpack.c.bf16 (!%p190_p9), %v321_v13, %v320_v12  ;;  %v323_v16 = vld [vmem:[%s912_s3 + $0x28] sm:$0xff] (!%p190_p9)  ;;  %v324_v18 = vld [vmem:[%s912_s3 + $0x30] sm:$0xff] (!%p190_p9)  ;;  %v325_v19 = vld [vmem:[%s912_s3 + $0x38] sm:$0xff] (!%p190_p9)  ;;  %s489_s30 = sshll.u32 (!%p190_p9), %s213_s26, 3 }
  0x11   : > { %570 = vmatprep.subr.bf16.mxu0 (!%p190_p9), %v707_v3  ;;  %575 = vmatpush3.bf16.msra.mxu1 (!%p190_p9), %v574_v11  ;;  %v580_v17 = vpack.c.bf16 (!%p190_p9), %v323_v16, %v322_v15  ;;  %v583_v20 = vpack.c.bf16 (!%p190_p9), %v325_v19, %v324_v18  ;;  %v326_v21 = vld [vmem:[%s912_s3 + $0x40] sm:$0xff] (!%p190_p9)  ;;  %v327_v22 = vld [vmem:[%s912_s3 + $0x48] sm:$0xff] (!%p190_p9)  ;;  %v328_v24 = vld [vmem:[%s912_s3 + $0x50] sm:$0xff] (!%p190_p9)  ;;  %s215_s9 = scalar_lea.vmem (!%p190_p9), [#allocation2], %s489_s30 }
  0x12   : > { %576 = vmatprep.subr.bf16.mxu1 (!%p190_p9), %v707_v3  ;;  %v586_v23 = vpack.c.bf16 (!%p190_p9), %v327_v22, %v326_v21  ;;  %v329_v25 = vld [vmem:[%s912_s3 + $0x58] sm:$0xff] (!%p190_p9)  ;;  %v330_v27 = vld [vmem:[%s912_s3 + $0x60] sm:$0xff] (!%p190_p9)  ;;  %v331_v28 = vld [vmem:[%s912_s3 + $0x68] sm:$0xff] (!%p190_p9)  ;;  %s426_s10 = sshll.u32 (!%p190_p9), %s215_s9, 4  ;;  %s868_s10 = int_to_ptr.vmem [resolvable:$true] %s426_s10 }
  0x13   : > { %v589_v26 = vpack.c.bf16 (!%p190_p9), %v329_v25, %v328_v24  ;;  %v592_v29 = vpack.c.bf16 (!%p190_p9), %v331_v28, %v330_v27  ;;  %v332_v30 = vld [vmem:[%s912_s3 + $0x70] sm:$0xff] (!%p190_p9)  ;;  %v333_v31 = vld [vmem:[%s912_s3 + $0x78] sm:$0xff] (!%p190_p9)  ;;  %v491_v33 = vld [vmem:[%s911_s2] ss:$0 sm:$0xff] (!%p190_p9)  ;;  %s643_s15 = scalar_lea.vmem (!%p190_p9), %s868_s10, 128 }
  0x14   : > { %572 = vmatpush3.bf16.msra.mxu0 (!%p190_p9), %v571_v7  ;;  %v595_v32 = vpack.c.bf16 (!%p190_p9), %v333_v31, %v332_v30  ;;  %v494_v47 = vld [vmem:[%s913_s4] ss:$0 sm:$0xff] (!%p190_p9)  ;;  %p644_p11 = scmp.ne.s32.totalorder (!%p190_p9), %s868_s10, %s643_s15 }
  0x15   : > { %s217_s13 = scalar_select %p216_p10, %s762_s22, 1  ;;  %578 = vmatpush3.bf16.msra.mxu1 %v577_v14 }
  0x16   : > { %579 = vmatprep.subr.bf16.mxu1 %v707_v3  ;;  %p645_p12 = pnand %p644_p11, %p779_p5  ;;  %s710_s22 = smov [#allocation2]  }
  0x17   : > { %s490_s14 = sshll.u32 %s217_s13, 3  ;;  %s866_s13 = scalar_lea.hbm %s914_s5, %s496_s8 }
  0x18   : > { %s219_s17 = scalar_lea.vmem %s909_s0, %s490_s14  ;;  %s413_s14 = scalar_lea.sflag [#allocation3], %s213_s26 }
  0x19   : > { %v220_v8 = vld [vmem:[%s219_s17] sm:$0xff]  ;;  %581 = vmatpush3.bf16.msra.mxu1 %v580_v17  ;;  %p646_p13 = pneg %p645_p12  ;;  %s647_s16 = sshll.u32 %s710_s22, 4  ;;  %s648_s16 = int_to_ptr.vmem [resolvable:$false] %s647_s16 }
  0x1a   : > { %530 = vmatmul.mubr.msk.f32.vlgmr.msra.gmra.mrb[0].mxu0 %vm232_vm1, %v220_v8  ;;  %582 = vmatprep.subr.bf16.mxu1 %v707_v3  ;;  %s649_s17 = scalar_lea.vmem %s648_s16, 256  ;;  %p650_p0 = scmp.lt.s32.totalorder %s868_s10, %s648_s16 }
  0x1b   : > { %p651_p1 = scmp.lt.s32.totalorder %s649_s17, %s643_s15 }
  0x1d   : > { %584 = vmatpush3.bf16.msra.mxu1 %v583_v20  ;;  %p652_p2 = por %p651_p1, %p650_p0 }
  0x1e   : > { %585 = vmatprep.subr.bf16.mxu1 %v707_v3 }
  0x1f   : > { %p653_p3 = pnand %p652_p2, %p646_p13 }
  0x21   : > { %587 = vmatpush3.bf16.msra.mxu1 %v586_v23 }
  0x22   : > { %588 = vmatprep.subr.bf16.mxu1 %v707_v3 }
  0x25   : > { %590 = vmatpush3.bf16.msra.mxu1 %v589_v26 }
  0x26   : > { %591 = vmatprep.subr.bf16.mxu1 %v707_v3 }
  0x29   : > { %593 = vmatpush3.bf16.msra.mxu1 %v592_v29 }
  0x2a   : > { %594 = vmatprep.subr.bf16.mxu1 %v707_v3 }
  0x2d   : > { %596 = vmatpush3.bf16.msra.mxu1 %v595_v32 }
  0xed   : > { %v302_v34 = vpop.f32.mrb[0].mxu0 }
  0xee   : > { %v303_v35 = vadd.f32 %v491_v33, %v302_v34  ;;  %v531_v36 = vpop.f32.mrb[1].mxu0 }
  0xf0   : > { %v306_v37 = vmul.f32 %v303_v35, %v303_v35 }
  0xf2   : > { %v307_v38 = vmul.f32 %v306_v37, %v303_v35 }
  0xf4   : > { %v308_v39 = vmul.f32 0.044715, %v307_v38 }
  0xf6   : > { %v309_v40 = vadd.f32 %v308_v39, %v303_v35 }
  0xf8   : > { %v493_v41 = vmul.f32 -1.5957692, %v309_v40 }
  0xfa   : > { %v312_v42 = vmul.f32 1.442695, %v493_v41 }
  0xfc   : > { %639 = vpow2.f32 %v312_v42 }
 0x106   : > { %v640_v43 = vpop.eup %639 }
 0x107   : > { %v314_v44 = vadd.f32 1.0, %v640_v43 }
 0x109   : > { %641 = vrcp.f32 %v314_v44 }
 0x113   : > { %v642_v45 = vpop.eup %641 }
 0x114   : > { %v317_v46 = vmul.f32 %v642_v45, %v303_v35 }
 0x116   : > { %565 = vmatmul.mubr.f32.vlgmr.msra.gmra.mrb[0].mxu1 %v317_v46 }
 0x1e9   : > { %v407_v48 = vpop.f32.mrb[0].mxu1 }
 0x1ea   : > { %v408_v49 = vadd.f32 %v494_v47, %v407_v48  ;;  %v566_v50 = vpop.f32.mrb[1].mxu1 }
 0x1ec   : > { %411 = vst.msk [vmem:[%s215_s9] sm:$0xff] %vm232_vm1, %v408_v49 }
 0x1ed   : > { %656 = shalt.err (!%p653_p3)
}
 0x1ee   : > { %s657_s23 = scalar_lea.hbm %s866_s13, 128  ;;  %s661_s30 = scalar_lea.hbm %s914_s5, 256 }
 0x1ef   : > { %p658_p4 = scmp.ne.s32.totalorder %s866_s13, %s657_s23  ;;  %p662_p9 = scmp.lt.u32.totalorder %s866_s13, %s914_s5 }
 0x1f0   : > { %p663_p10 = scmp.lt.u32.totalorder %s661_s30, %s657_s23  ;;  %p665_p12 = scmp.lt.u32.totalorder %s657_s23, %s866_s13 }
 0x1f1   : > { %p659_p7 = pnand %p658_p4, %p779_p5 }
 0x1f2   : > { %p664_p11 = por %p663_p10, %p662_p9 }
 0x1f3   : > { %p660_p8 = pneg %p659_p7 }
 0x1f4   : > { %p666_p13 = por %p665_p12, %p664_p11 }
 0x1f6   : > { %p667_p0 = pnand %p666_p13, %p660_p8 }
 0x1f8   : > { %670 = shalt.err (!%p667_p0)
}
 0x1f9   : > { %597 = dma.vmem_to_hbm [thread:$0]  (%p779_p5), %s868_s10, 128, %s866_s13, %s413_s14  }
 0x1fa PF: > { %p603_p1 = scmp.ge.s32.totalorder %s705_s21, 2  ;;  %s438_s8 = sand.u32 1, %s693_s18  }
 0x1fb   : > { %s439_s9 = scalar_lea.sflag [#allocation3], %s438_s8 }
 0x1fc   : > { %p600_p2 = pnand %p603_p1, %p783_p6 }
 0x1fe   : > { %688 = dma.done.wait (!%p600_p2), %s439_s9, 128  }
 0x1ff   : > { %690 = vsyncadd (!%p600_p2), %s439_s9, 4294967168  ;;  %p15_p3 = scmp.ge.s32.totalorder %s766_s24, 4   ;;  %s917_s18 = smov %s697_s19 }
 0x200   : > { %s918_s19 = smov %s701_s20  ;;  %s919_s20 = smov %s777_s27 }
 0x201   : > { %s920_s21 = smov %s766_s24  ;;  %17 = sbr.rel (!%p15_p3) target bundleno = 3 (0x3), region = 75 }
 0x208   :  { %444 = vsyncpa [#allocation3], 1 }
 0x209   :  { %446 = vsyncpa [#allocation3 + $0x1], 1 }

</bundles_post_ra>
